<compile_context>
chip_gen: v7x
topology: tpu7x:2x2x1
jax: 0.10.0
libtpu: 0.0.40
codegen_flags: <defaults>
</compile_context>

<pallas_src>
import functools

import jax
import jax.numpy as jnp
from jax.experimental import pallas as pl
from jax.experimental.pallas import tpu as pltpu


def _displacement_kernel(x_ref, he_ref,
                         w1_ref, b1_ref,
                         w2_ref, b2_ref,
                         w3_ref, b3_ref,
                         w4_ref,
                         o_ref):
    # Compute dtype for the tanh layers / MXU inputs is carried by the weight
    # dtype: bf16 on v6e/v7x (~2x EUP throughput on the binding slot), f32 on
    # v5e which has no bf16 EUP/VPU path.
    cdt = w2_ref.dtype

    x = x_ref[...]                                        # (2, TM) single load
    x0 = x[0:1, :]                                        # (1, TM)
    x1 = x[1:2, :]                                        # (1, TM)

    # lin1 (in=2) as VPU broadcast multiply-adds; K=2 would waste the MXU.
    w1 = w1_ref[...]                                      # (48, 2) f32
    h = w1[:, 0:1] * x0 + w1[:, 1:2] * x1 + b1_ref[...]   # (48, TM) f32
    h = jnp.tanh(h.astype(cdt))

    # lin2 -> tanh  (MXU, f32 accumulation, lane-dense activations)
    h = jnp.dot(w2_ref[...], h, preferred_element_type=jnp.float32) + b2_ref[...]
    h = jnp.tanh(h.astype(cdt))                           # (48, TM)

    # lin3 -> tanh
    h = jnp.dot(w3_ref[...], h, preferred_element_type=jnp.float32) + b3_ref[...]
    h = jnp.tanh(h.astype(cdt))                           # (32, TM)

    # lin4 (no bias)
    y = jnp.dot(w4_ref[...], h, preferred_element_type=jnp.float32)   # (2, TM)

    # bdry_mask = (x0 - 0)(x0 - 1)(x1 + 1)(x1 - 0), shape (1, TM), f32.
    mask = x0 * (x0 - 1.0) * (x1 + 1.0) * x1

    # NOTE: bias folding into the MXU (ones-row trick) only pays if a bundle
    # dump shows VALU (not EUP) saturating; expected binding slot is EUP.
    o_ref[...] = y * mask + he_ref[...]                   # (2, TM) lane-dense f32


def _round_up(a, b):
    return ((a + b - 1) // b) * b


def _pick_tile(M, tm):
    """Lane tile: multiple of 128, <= padded M, and >= 2 grid steps when
    M >= 256 so a dual-TensorCore chip (v7x) shards the parallel axis."""
    tm = max(128, min(tm, _round_up(M, 128)))
    if M >= 256:
        tm = min(tm, _round_up((M + 1) // 2, 128))
    return tm


def _default_compute_dtype():
    """bf16 tanh/activations only where the EUP/VPU is bf16-capable."""
    try:
        kind = jax.devices()[0].device_kind.lower()
    except Exception:
        return "float32"
    if any(old in kind for old in ("v2", "v3", "v4", "v5")):
        return "float32"
    if any(new in kind for new in ("v6", "v7", "6e", "7x")):
        return "bfloat16"
    return "float32"


@functools.partial(jax.jit, static_argnames=("tm", "compute_dtype"))
def _forward(x, he, params, *, tm, compute_dtype):
    B, N, F = x.shape
    M = B * N
    cdt = jnp.dtype(compute_dtype)

    tile = _pick_tile(M, tm)
    Mp = _round_up(M, tile)
    grid = Mp // tile

    w1, b1, w2, b2, w3, b3, w4 = params
    w1t = jnp.asarray(w1, jnp.float32).T                  # (48, 2)  f32 (VPU MACs)
    w2t = jnp.asarray(w2, jnp.float32).T.astype(cdt)      # (48, 48) compute dtype
    w3t = jnp.asarray(w3, jnp.float32).T.astype(cdt)      # (32, 48)
    w4t = jnp.asarray(w4, jnp.float32).T.astype(cdt)      # (2, 32)
    b1c = jnp.asarray(b1, jnp.float32).reshape(48, 1)
    b2c = jnp.asarray(b2, jnp.float32).reshape(48, 1)
    b3c = jnp.asarray(b3, jnp.float32).reshape(32, 1)

    # Two separate feature-major streams (no concat pass); padded points map
    # to x=(0,0) -> mask=0, he=0 -> output 0, sliced off after the kernel.
    x_t = jnp.asarray(x, jnp.float32).reshape(M, 2).T     # (2, M)
    he_t = jnp.asarray(he, jnp.float32).reshape(M, 2).T   # (2, M)
    if Mp != M:
        pad = ((0, 0), (0, Mp - M))
        x_t = jnp.pad(x_t, pad)
        he_t = jnp.pad(he_t, pad)

    full = lambda r, c: pl.BlockSpec((r, c), lambda i: (0, 0))

    cost = pl.CostEstimate(
        flops=2 * Mp * (2 * 48 + 48 * 48 + 48 * 32 + 32 * 2),
        transcendentals=(48 + 48 + 32) * Mp,
        bytes_accessed=(2 + 2 + 2) * Mp * 4
        + 4 * (48 * 2 + 48 + 48 + 32)
        + cdt.itemsize * (48 * 48 + 48 * 32 + 32 * 2),
    )

    out = pl.pallas_call(
        _displacement_kernel,
        out_shape=jax.ShapeDtypeStruct((2, Mp), jnp.float32),
        grid_spec=pltpu.PrefetchScalarGridSpec(
            num_scalar_prefetch=0,
            grid=(grid,),
            in_specs=[
                pl.BlockSpec((2, tile), lambda i: (0, i)),   # x^T lane tile
                pl.BlockSpec((2, tile), lambda i: (0, i)),   # he^T lane tile
                full(48, 2),  full(48, 1),                   # lin1 (transposed)
                full(48, 48), full(48, 1),                   # lin2
                full(32, 48), full(32, 1),                   # lin3
                full(2, 32),                                 # lin4 (no bias)
            ],
            out_specs=pl.BlockSpec((2, tile), lambda i: (0, i)),
        ),
        compiler_params=pltpu.CompilerParams(
            dimension_semantics=("parallel",)),
        cost_estimate=cost,
    )(x_t, he_t, w1t, b1c, w2t, b2c, w3t, b3c, w4t)

    # If consumers accept the lane-dense feature-major layout, return
    # out[:, :M] directly and skip this badly-shaped (2, M)->(M, 2) transpose.
    return out[:, :M].T.reshape(B, N, 2)


def displacement_network(x, he, params, *, tm=4096, compute_dtype=None):
    """x, he: (B, N, 2) float32.  Returns (B, N, 2) float32.

    params = (w1, b1, w2, b2, w3, b3, w4) stored (in, out), matching the
    reference y = x @ W + b; transposed to (out, in) for the kernel.
    """
    if compute_dtype is None:
        compute_dtype = _default_compute_dtype()
    return _forward(x, he, params, tm=int(tm), compute_dtype=str(compute_dtype))


def init_params(key):
    """Deterministic parameter init.  Weights stored as (in, out) so the
    reference computes x @ W + b (equivalent to PyTorch's x @ W_pt.T + b)."""
    ks = jax.random.split(key, 7)
    scale = 0.1
    w1 = scale * jax.random.normal(ks[0], (2, 48), jnp.float32)
    b1 = scale * jax.random.normal(ks[1], (1, 48), jnp.float32)
    w2 = scale * jax.random.normal(ks[2], (48, 48), jnp.float32)
    b2 = scale * jax.random.normal(ks[3], (1, 48), jnp.float32)
    w3 = scale * jax.random.normal(ks[4], (48, 32), jnp.float32)
    b3 = scale * jax.random.normal(ks[5], (1, 32), jnp.float32)
    w4 = scale * jax.random.normal(ks[6], (32, 2), jnp.float32)
    return (w1, b1, w2, b2, w3, b3, w4)


def _reference(x, he, params):
    w1, b1, w2, b2, w3, b3, w4 = params
    y = jnp.tanh(x @ w1 + b1)
    y = jnp.tanh(y @ w2 + b2)
    y = jnp.tanh(y @ w3 + b3)
    y = y @ w4
    mask = ((x[..., 0] - 0.0) * (x[..., 0] - 1.0)
            * (x[..., 1] + 1.0) * (x[..., 1] - 0.0))[..., None]
    return y * mask + he


if __name__ == "__main__":
    key = jax.random.PRNGKey(0)
    k_param, k_x, k_he = jax.random.split(key, 3)

    # 512 points total -> tile capped to 256, grid of 2 "parallel" steps
    # (exercises the dual-TC split on v7x, harmless elsewhere).
    B, N = 2, 256
    params = init_params(k_param)

    # x in [0,1] x [-1,0] like the cusp-square reference domain.
    u = jax.random.uniform(k_x, (B, N, 2), jnp.float32)
    x = jnp.stack([u[..., 0], -u[..., 1]], axis=-1)

    # Synthetic stand-in for the precomputed FEM harmonic extension field.
    he = 0.01 * jax.random.normal(k_he, (B, N, 2), jnp.float32)

    compute_dtype = _default_compute_dtype()
    out = displacement_network(x, he, params, tm=4096, compute_dtype=compute_dtype)
    out = jax.block_until_ready(out)

    ref = _reference(x, he, params)
    assert out.shape == (B, N, 2)
    if compute_dtype == "float32":
        atol, rtol = 1e-5, 1e-5
    else:  # bf16 tanh/activation path on v6e/v7x
        atol, rtol = 5e-3, 2e-2
    assert jnp.allclose(out, ref, atol=atol, rtol=rtol)

    print("KERNEL_OK")
</pallas_src>

<mosaic_0001>
module attributes {stable_mosaic.version = 11 : i64} {
  func.func @_displacement_kernel(%arg0: i32, %arg1: memref<2x256xf32, #tpu.memory_space<vmem>>, %arg2: memref<2x256xf32, #tpu.memory_space<vmem>>, %arg3: memref<48x2xf32, #tpu.memory_space<vmem>>, %arg4: memref<48x1xf32, #tpu.memory_space<vmem>>, %arg5: memref<48x48xf32, #tpu.memory_space<vmem>>, %arg6: memref<48x1xf32, #tpu.memory_space<vmem>>, %arg7: memref<32x48xf32, #tpu.memory_space<vmem>>, %arg8: memref<32x1xf32, #tpu.memory_space<vmem>>, %arg9: memref<2x32xf32, #tpu.memory_space<vmem>>, %arg10: memref<2x256xf32, #tpu.memory_space<vmem>>) attributes {dimension_semantics = [#tpu.dimension_semantics<parallel>], iteration_bounds = array<i64: 2>, scalar_prefetch = 0 : i64, scratch_operands = 0 : i64, tpu.core_type = #tpu.core_type<tc>, window_params = [{transform_indices = @transform_0, window_bounds = array<i64: 2, 256>}, {transform_indices = @transform_1, window_bounds = array<i64: 2, 256>}, {pipeline_mode = #tpu.pipeline_mode<synchronous>, transform_indices = @transform_2, window_bounds = array<i64: 48, 2>}, {pipeline_mode = #tpu.pipeline_mode<synchronous>, transform_indices = @transform_3, window_bounds = array<i64: 48, 1>}, {pipeline_mode = #tpu.pipeline_mode<synchronous>, transform_indices = @transform_4, window_bounds = array<i64: 48, 48>}, {pipeline_mode = #tpu.pipeline_mode<synchronous>, transform_indices = @transform_5, window_bounds = array<i64: 48, 1>}, {pipeline_mode = #tpu.pipeline_mode<synchronous>, transform_indices = @transform_6, window_bounds = array<i64: 32, 48>}, {pipeline_mode = #tpu.pipeline_mode<synchronous>, transform_indices = @transform_7, window_bounds = array<i64: 32, 1>}, {pipeline_mode = #tpu.pipeline_mode<synchronous>, transform_indices = @transform_8, window_bounds = array<i64: 2, 32>}, {transform_indices = @transform_9, window_bounds = array<i64: 2, 256>}]} {
    %c0 = arith.constant 0 : index
    %c0_0 = arith.constant 0 : index
    %0 = vector.load %arg1[%c0, %c0_0] : memref<2x256xf32, #tpu.memory_space<vmem>>, vector<2x256xf32>
    %1 = vector.extract_strided_slice %0 {offsets = [0, 0], sizes = [1, 256], strides = [1, 1]} : vector<2x256xf32> to vector<1x256xf32>
    %2 = vector.extract_strided_slice %0 {offsets = [1, 0], sizes = [1, 256], strides = [1, 1]} : vector<2x256xf32> to vector<1x256xf32>
    %c0_1 = arith.constant 0 : index
    %c0_2 = arith.constant 0 : index
    %3 = vector.load %arg3[%c0_1, %c0_2] : memref<48x2xf32, #tpu.memory_space<vmem>>, vector<48x2xf32>
    %4 = vector.extract_strided_slice %3 {offsets = [0, 0], sizes = [48, 1], strides = [1, 1]} : vector<48x2xf32> to vector<48x1xf32>
    %5 = vector.broadcast %4 : vector<48x1xf32> to vector<48x256xf32>
    %6 = vector.broadcast %1 : vector<1x256xf32> to vector<48x256xf32>
    %7 = arith.mulf %5, %6 : vector<48x256xf32>
    %8 = vector.extract_strided_slice %3 {offsets = [0, 1], sizes = [48, 1], strides = [1, 1]} : vector<48x2xf32> to vector<48x1xf32>
    %9 = vector.broadcast %8 : vector<48x1xf32> to vector<48x256xf32>
    %10 = vector.broadcast %2 : vector<1x256xf32> to vector<48x256xf32>
    %11 = arith.mulf %9, %10 : vector<48x256xf32>
    %12 = arith.addf %7, %11 : vector<48x256xf32>
    %c0_3 = arith.constant 0 : index
    %c0_4 = arith.constant 0 : index
    %13 = vector.load %arg4[%c0_3, %c0_4] : memref<48x1xf32, #tpu.memory_space<vmem>>, vector<48x1xf32>
    %14 = vector.broadcast %13 : vector<48x1xf32> to vector<48x256xf32>
    %15 = arith.addf %12, %14 : vector<48x256xf32>
    %16 = math.tanh %15 : vector<48x256xf32>
    %c0_5 = arith.constant 0 : index
    %c0_6 = arith.constant 0 : index
    %17 = vector.load %arg5[%c0_5, %c0_6] : memref<48x48xf32, #tpu.memory_space<vmem>>, vector<48x48xf32>
    %cst = arith.constant dense<0.000000e+00> : vector<48x256xf32>
    %18 = tpu.matmul %17, %16, %cst {dimension_numbers = #tpu.dot_dimension_numbers<[1], [0], [0], [1], [0, 0, 1, 1], [], []>} : vector<48x48xf32>, vector<48x256xf32>, vector<48x256xf32> -> vector<48x256xf32>
    %c0_7 = arith.constant 0 : index
    %c0_8 = arith.constant 0 : index
    %19 = vector.load %arg6[%c0_7, %c0_8] : memref<48x1xf32, #tpu.memory_space<vmem>>, vector<48x1xf32>
    %20 = vector.broadcast %19 : vector<48x1xf32> to vector<48x256xf32>
    %21 = arith.addf %18, %20 : vector<48x256xf32>
    %22 = math.tanh %21 : vector<48x256xf32>
    %c0_9 = arith.constant 0 : index
    %c0_10 = arith.constant 0 : index
    %23 = vector.load %arg7[%c0_9, %c0_10] : memref<32x48xf32, #tpu.memory_space<vmem>>, vector<32x48xf32>
    %cst_11 = arith.constant dense<0.000000e+00> : vector<32x256xf32>
    %24 = tpu.matmul %23, %22, %cst_11 {dimension_numbers = #tpu.dot_dimension_numbers<[1], [0], [0], [1], [0, 0, 1, 1], [], []>} : vector<32x48xf32>, vector<48x256xf32>, vector<32x256xf32> -> vector<32x256xf32>
    %c0_12 = arith.constant 0 : index
    %c0_13 = arith.constant 0 : index
    %25 = vector.load %arg8[%c0_12, %c0_13] : memref<32x1xf32, #tpu.memory_space<vmem>>, vector<32x1xf32>
    %26 = vector.broadcast %25 : vector<32x1xf32> to vector<32x256xf32>
    %27 = arith.addf %24, %26 : vector<32x256xf32>
    %28 = math.tanh %27 : vector<32x256xf32>
    %c0_14 = arith.constant 0 : index
    %c0_15 = arith.constant 0 : index
    %29 = vector.load %arg9[%c0_14, %c0_15] : memref<2x32xf32, #tpu.memory_space<vmem>>, vector<2x32xf32>
    %cst_16 = arith.constant dense<0.000000e+00> : vector<2x256xf32>
    %30 = tpu.matmul %29, %28, %cst_16 {dimension_numbers = #tpu.dot_dimension_numbers<[1], [0], [0], [1], [0, 0, 1, 1], [], []>} : vector<2x32xf32>, vector<32x256xf32>, vector<2x256xf32> -> vector<2x256xf32>
    %cst_17 = arith.constant 1.000000e+00 : f32
    %31 = vector.broadcast %cst_17 : f32 to vector<1x256xf32>
    %32 = arith.subf %1, %31 : vector<1x256xf32>
    %33 = arith.mulf %1, %32 : vector<1x256xf32>
    %cst_18 = arith.constant 1.000000e+00 : f32
    %34 = vector.broadcast %cst_18 : f32 to vector<1x256xf32>
    %35 = arith.addf %2, %34 : vector<1x256xf32>
    %36 = arith.mulf %33, %35 : vector<1x256xf32>
    %37 = arith.mulf %36, %2 : vector<1x256xf32>
    %38 = vector.broadcast %37 : vector<1x256xf32> to vector<2x256xf32>
    %39 = arith.mulf %30, %38 : vector<2x256xf32>
    %c0_19 = arith.constant 0 : index
    %c0_20 = arith.constant 0 : index
    %40 = vector.load %arg2[%c0_19, %c0_20] : memref<2x256xf32, #tpu.memory_space<vmem>>, vector<2x256xf32>
    %41 = arith.addf %39, %40 : vector<2x256xf32>
    %c0_21 = arith.constant 0 : index
    %c0_22 = arith.constant 0 : index
    %42 = vector.load %arg10[%c0_21, %c0_22] : memref<2x256xf32, #tpu.memory_space<vmem>>, vector<2x256xf32>
    tpu.vector_store %arg10[%c0_21, %c0_22], %41 {strides = array<i32>} : memref<2x256xf32, #tpu.memory_space<vmem>>, vector<2x256xf32>,
    return
  }
  func.func @transform_0(%arg0: i32) -> (i32, i32) {
    %c0_i32 = arith.constant 0 : i32
    %c0_i32_0 = arith.constant 0 : i32
    return %c0_i32, %arg0 : i32, i32
  }
  func.func @transform_1(%arg0: i32) -> (i32, i32) {
    %c0_i32 = arith.constant 0 : i32
    %c0_i32_0 = arith.constant 0 : i32
    return %c0_i32, %arg0 : i32, i32
  }
  func.func @transform_2(%arg0: i32) -> (i32, i32) {
    %c0_i32 = arith.constant 0 : i32
    %c0_i32_0 = arith.constant 0 : i32
    %c0_i32_1 = arith.constant 0 : i32
    return %c0_i32, %c0_i32_0 : i32, i32
  }
  func.func @transform_3(%arg0: i32) -> (i32, i32) {
    %c0_i32 = arith.constant 0 : i32
    %c0_i32_0 = arith.constant 0 : i32
    %c0_i32_1 = arith.constant 0 : i32
    return %c0_i32, %c0_i32_0 : i32, i32
  }
  func.func @transform_4(%arg0: i32) -> (i32, i32) {
    %c0_i32 = arith.constant 0 : i32
    %c0_i32_0 = arith.constant 0 : i32
    %c0_i32_1 = arith.constant 0 : i32
    return %c0_i32, %c0_i32_0 : i32, i32
  }
  func.func @transform_5(%arg0: i32) -> (i32, i32) {
    %c0_i32 = arith.constant 0 : i32
    %c0_i32_0 = arith.constant 0 : i32
    %c0_i32_1 = arith.constant 0 : i32
    return %c0_i32, %c0_i32_0 : i32, i32
  }
  func.func @transform_6(%arg0: i32) -> (i32, i32) {
    %c0_i32 = arith.constant 0 : i32
    %c0_i32_0 = arith.constant 0 : i32
    %c0_i32_1 = arith.constant 0 : i32
    return %c0_i32, %c0_i32_0 : i32, i32
  }
  func.func @transform_7(%arg0: i32) -> (i32, i32) {
    %c0_i32 = arith.constant 0 : i32
    %c0_i32_0 = arith.constant 0 : i32
    %c0_i32_1 = arith.constant 0 : i32
    return %c0_i32, %c0_i32_0 : i32, i32
  }
  func.func @transform_8(%arg0: i32) -> (i32, i32) {
    %c0_i32 = arith.constant 0 : i32
    %c0_i32_0 = arith.constant 0 : i32
    %c0_i32_1 = arith.constant 0 : i32
    return %c0_i32, %c0_i32_0 : i32, i32
  }
  func.func @transform_9(%arg0: i32) -> (i32, i32) {
    %c0_i32 = arith.constant 0 : i32
    %c0_i32_0 = arith.constant 0 : i32
    return %c0_i32, %arg0 : i32, i32
  }
}

</mosaic_0001>

<bundles_post_ra>
// kernel: _forward.1
= control target key start
LH: loop header
LB: loop body
LE: loop exit
PB: predicated region body
PF: predicated region fallthrough
CT: control target
= control target key end

     0   :  { %14 = vsyncpa [#allocation3], 0  ;;  %s1654_s0 = inlined_call_operand.vmem [shape: f32[2,512], index: 0, kind: input, shape index: {}]   ;;  %s1655_s1 = inlined_call_operand.vmem [shape: f32[2,512], index: 1, kind: input, shape index: {}]   ;;  %s1656_s2 = inlined_call_operand.vmem [shape: f32[48,2], index: 2, kind: input, shape index: {}]   ;;  %s1657_s3 = inlined_call_operand.vmem [shape: f32[48,1], index: 3, kind: input, shape index: {}]   ;;  %s1658_s4 = inlined_call_operand.vmem [shape: f32[48,48], index: 4, kind: input, shape index: {}]   ;;  %s1659_s5 = inlined_call_operand.vmem [shape: f32[48,1], index: 5, kind: input, shape index: {}]   ;;  %s1660_s6 = inlined_call_operand.vmem [shape: f32[32,48], index: 6, kind: input, shape index: {}]   ;;  %s1661_s7 = inlined_call_operand.vmem [shape: f32[32,1], index: 7, kind: input, shape index: {}]   ;;  %s1662_s8 = inlined_call_operand.vmem [shape: f32[2,32], index: 8, kind: input, shape index: {}]   ;;  %s1663_s9 = inlined_call_operand.hbm [shape: f32[2,512], index: 9, kind: output, shape index: {}]  }
   0x1   :  { %16 = vsyncpa [#allocation3 + $0x1], 0  ;;  %s1377_s30 = smov 0   ;;  %s1379_s10 = smov 0  }
   0x2   :  { %s1381_s11 = smov 0   ;;  %s1383_s12 = smov 0  }
   0x3 LB: > { %s1398_s13 = sadd.s32 4294967295, %s1321_s12   ;;  %s1082_s14 = sadd.s32 4294967294, %s1321_s12   ;;  %s1321_s12 = sphi %s1383_s12, %s1669_s12   ;;  %s1317_s11 = sphi %s1381_s11, %s1668_s11   ;;  %s1313_s10 = sphi %s1379_s10, %s1667_s10   ;;  %s1309_s30 = sphi %s1377_s30, %s1666_s30  }
   0x4   : > { %s1402_s15 = sadd.s32 1, %s1321_s12   ;;  %s228_s16 = sadd.s32 1, %s1317_s11 }
   0x5   : > { %s225_s17 = ssub.s32 %s1321_s12, %s1402_s15  ;;  %p238_p0 = scmp.ne.s32.totalorder %s1317_s11, %s1313_s10 }
   0x6   : > { %p226_p1 = scmp.eq.s32.totalorder %s225_s17, 0  ;;  %p239_p2 = scmp.eq.s32.totalorder %s1398_s13, 1 }
   0x7   : > { %p244_p3 = scmp.ne.s32.totalorder %s1313_s10, %s1309_s30  ;;  %p245_p4 = scmp.eq.s32.totalorder %s1082_s14, 1 }
   0x8   : > { %s1413_s18 = scalar_select %p226_p1, %s1317_s11, %s228_s16  }
   0x9   : > { %p1415_p5 = por %p239_p2, %p238_p0  ;;  %p1419_p6 = por %p245_p4, %p244_p3 }
   0xa   : > { %p1085_p7 = scmp.ge.s32.totalorder %s1321_s12, 1  ;;  %p302_p8 = scmp.lt.s32.totalorder %s1321_s12, 3 }
   0xc   : > { %p303_p9 = pnand %p1085_p7, %p302_p8 }
   0xd   : > { %v359_v0 = vld [vmem:[%s1656_s2 + $0x10] sm:$0xff] (!%p303_p9)  ;;  %v357_v1 = vld [vmem:[%s1656_s2] sm:$0xff] (!%p303_p9)  ;;  %v1323_v2 = vmov (!%p303_p9), 1   ;;  %v358_v4 = vld [vmem:[%s1656_s2 + $0x8] sm:$0xff] (!%p303_p9)  ;;  %v1324_v6 = vmov (!%p303_p9), 0   ;;  %v1325_v24 = vmov (!%p303_p9), 0.0   ;;  %v394_v25 = vlaneseq (!%p303_p9) }
   0xe   : > { %306 = sbr.rel (%p303_p9) target bundleno = 937 (0x3a9), region = 56  ;;  %1189 = vset.pattern.permute.xlu0 (!%p303_p9), %v1323_v2  ;;  %1187 = vset.pattern.permute.xlu1 (!%p303_p9), %v1323_v2  ;;  %v361_v3 = vld [vmem:[%s1656_s2 + $0x20] sm:$0xff] (!%p303_p9)  ;;  %v360_v5 = vld [vmem:[%s1656_s2 + $0x18] sm:$0xff] (!%p303_p9)  ;;  %v491_v8 = vld [vmem:[%s1657_s3 + $0x8] sm:$0xff] (!%p303_p9)  ;;  %s1087_s29 = sshll.u32 (!%p303_p9), %s1398_s13, 1  ;;  %vm592_vm0 = vcmask (!%p303_p9), 392192  }
   0xf   : > { %433 = vperm.xlu0 (!%p303_p9), %1189, %v359_v0   ;;  %425 = vperm.xlu1 (!%p303_p9), %1187, %v357_v1   ;;  %v490_v7 = vld [vmem:[%s1657_s3] sm:$0xff] (!%p303_p9)  ;;  %v493_v9 = vld [vmem:[%s1657_s3 + $0x18] sm:$0xff] (!%p303_p9)  ;;  %v362_v10 = vld [vmem:[%s1656_s2 + $0x28] sm:$0xff] (!%p303_p9)  ;;  %p344_p10 = scmp.lt.s32.totalorder (!%p303_p9), %s1087_s29, 3  ;;  %v1497_v26 = vshrl.u32 (!%p303_p9), %v394_v25, 7  ;;  %vm862_vm1 = vcmask (!%p303_p9), 261120  }
  0x10   : > { %v556_v11 = vld [vmem:[%s1659_s5] sm:$0xff] (!%p303_p9)  ;;  %v558_v12 = vld [vmem:[%s1659_s5 + $0x10] sm:$0xff] (!%p303_p9)  ;;  %v495_v18 = vld [vmem:[%s1657_s3 + $0x28] sm:$0xff] (!%p303_p9)  ;;  %675 = vmatprep.mubr.f32.mxu0 (!%p303_p9), %v1325_v24  ;;  %828 = vmatprep.mubr.f32.mxu1 (!%p303_p9), %v1325_v24  ;;  %s340_s27 = sand.u32 (!%p303_p9), 1, %s1313_s10  }
  0x11   : > { %v560_v13 = vld [vmem:[%s1659_s5 + $0x20] sm:$0xff] (!%p303_p9)  ;;  %v492_v14 = vld [vmem:[%s1657_s3 + $0x10] sm:$0xff] (!%p303_p9)  ;;  %v557_v19 = vld [vmem:[%s1659_s5 + $0x8] sm:$0xff] (!%p303_p9)  ;;  %v1505_v29 = vsub.s32 (!%p303_p9), 0, %v1497_v26  ;;  %v400_v30 = vsub.s32 (!%p303_p9), 2, %v1497_v26  ;;  %v450_v31 = vsub.s32 (!%p303_p9), 1, %v1497_v26 }
  0x12   : > { %v728_v15 = vld [vmem:[%s1661_s7] sm:$0xff] (!%p303_p9)  ;;  %v730_v17 = vld [vmem:[%s1661_s7 + $0x10] sm:$0xff] (!%p303_p9)  ;;  %v559_v20 = vld [vmem:[%s1659_s5 + $0x18] sm:$0xff] (!%p303_p9)  ;;  %v454_v32 = vsub.s32 (!%p303_p9), 3, %v1497_v26  ;;  %s1086_s28 = sshll.u32 (!%p303_p9), %s340_s27, 2  ;;  %s997_s23 = scalar_lea.sflag (!%p303_p9), [#allocation3], %s340_s27 }
  0x13   : > { %441 = vperm.xlu0 (!%p303_p9), %1189, %v361_v3   ;;  %429 = vperm.xlu1 (!%p303_p9), %1187, %v358_v4   ;;  %v494_v16 = vld [vmem:[%s1657_s3 + $0x20] sm:$0xff] (!%p303_p9)  ;;  %v561_v21 = vld [vmem:[%s1659_s5 + $0x28] sm:$0xff] (!%p303_p9)  ;;  %v731_v23 = vld [vmem:[%s1661_s7 + $0x18] sm:$0xff] (!%p303_p9)  ;;  %s342_s16 = scalar_lea.vmem (!%p303_p9), [#allocation2], %s1086_s28 }
  0x14   : > { %v729_v22 = vld [vmem:[%s1661_s7 + $0x8] sm:$0xff] (!%p303_p9) }
  0x15   : > { %s1671_s29 = smov (!%p344_p10, %s1087_s29), 3 }
  0x16   : > { %s1088_s14 = sshll.u32 %s1671_s29, 1  ;;  %s1112_s29 = sshll.u32 %s1398_s13, 6 }
  0x17   : > { %1192 = vset.pattern.permute.xlu0 %v1324_v6  ;;  %1188 = vset.pattern.permute.xlu1 %v1324_v6  ;;  %s347_s21 = scalar_lea.vmem %s1654_s0, %s1088_s14  ;;  %s353_s26 = scalar_lea.vmem %s1655_s1, %s1088_s14 }
  0x18   : > { %365 = vperm.xlu0 %1192, %v357_v1   ;;  %380 = vperm.xlu1 %1188, %v360_v5   ;;  %v1512_v35 = vld [vmem:[%s347_s21] sm:$0xf]  ;;  %s1011_s14 = sshll.u32 %s342_s16, 4  ;;  %s1612_s22 = scalar_lea.hbm %s1663_s9, %s1112_s29  ;;  %s1614_s14 = int_to_ptr.vmem [resolvable:$true] %s1011_s14 }
  0x19   : > { %v397_v36 = vrot.slane %v1512_v35, %v1505_v29  ;;  %v401_v37 = vrot.slane %v1512_v35, %v400_v30  ;;  %v451_v38 = vrot.slane %v1512_v35, %v450_v31  ;;  %v455_v39 = vrot.slane %v1512_v35, %v454_v32  ;;  %s1259_s24 = scalar_lea.vmem %s1614_s14, 64  ;;  %s1326_s13 = smov [#allocation2]  }
  0x1a   : > { %p1260_p11 = scmp.ne.s32.totalorder %s1614_s14, %s1259_s24  ;;  %s1263_s25 = sshll.u32 %s1326_s13, 4  ;;  %s1264_s25 = int_to_ptr.vmem [resolvable:$false] %s1263_s25 }
  0x1b   : > { %v1522_v42 = vrot.slane %v397_v36, %v1505_v29  ;;  %v1525_v43 = vrot.slane %v401_v37, %v1505_v29  ;;  %v461_v44 = vrot.slane %v451_v38, %v450_v31  ;;  %v465_v45 = vrot.slane %v455_v39, %v450_v31  ;;  %p1266_p0 = scmp.lt.s32.totalorder %s1614_s14, %s1264_s25 }
  0x1c   : > { %370 = vperm.xlu0 %1192, %v358_v4   ;;  %1190 = vset.pattern.permute.xlu1 %v1323_v2  ;;  %p1261_p12 = pnand %p1260_p11, %p1415_p5 }
  0x1d   : > { %437 = vperm.xlu1 %1190, %v360_v5  }
  0x1e   : > { %p1262_p13 = pneg %p1261_p12 }
  0x20   : > { %375 = vperm.xlu0 %1192, %v359_v0  }
  0x21   : > { %1191 = vset.pattern.permute.xlu1 %v1324_v6 }
  0x22   : > { %498 = vperm.xlu1 %1191, %v490_v7  }
  0x24   : > { %503 = vperm.xlu0 %1192, %v491_v8  }
  0x26   : > { %385 = vperm.xlu1 %1191, %v361_v3  }
  0x28   : > { %513 = vperm.xlu0 %1192, %v493_v9  }
  0x2a   : > { %390 = vperm.xlu1 %1191, %v362_v10  }
  0x2c   : > { %564 = vperm.xlu0 %1192, %v556_v11  }
  0x2e   : > { %1193 = vset.pattern.permute.xlu1 %v1323_v2 }
  0x2f   : > { %445 = vperm.xlu1 %1193, %v362_v10  }
  0x30   : > { %574 = vperm.xlu0 %1192, %v558_v12  }
  0x33   : > { %1194 = vset.pattern.permute.xlu1 %v1324_v6 }
  0x34   : > { %584 = vperm.xlu0 %1192, %v560_v13   ;;  %508 = vperm.xlu1 %1194, %v492_v14  }
  0x38   : > { %734 = vperm.xlu0 %1192, %v728_v15   ;;  %518 = vperm.xlu1 %1194, %v494_v16  }
  0x3c   : > { %744 = vperm.xlu0 %1192, %v730_v17   ;;  %523 = vperm.xlu1 %1194, %v495_v18  }
  0x40   : > { %569 = vperm.xlu1 %1194, %v557_v19  }
  0x44   : > { %579 = vperm.xlu1 %1194, %v559_v20  }
  0x48   : > { %589 = vperm.xlu1 %1194, %v561_v21  }
  0x4c   : > { %739 = vperm.xlu1 %1194, %v729_v22  }
  0x50   : > { %749 = vperm.xlu1 %1194, %v731_v23  }
  0x8e   : > { %v426_v27 = vpop.permute.xlu1 %425  ;;  %v434_v28 = vpop.permute.xlu0 %433 }
  0x8f   : > { %v466_v50 = vmul.f32 %v461_v44, %v426_v27  ;;  %v467_v51 = vmul.f32 %v465_v45, %v426_v27  ;;  %v470_v8 = vmul.f32 %v461_v44, %v434_v28  ;;  %v471_v12 = vmul.f32 %v465_v45, %v434_v28 }
  0x92   : > { %v430_v33 = vpop.permute.xlu1 %429  ;;  %v1510_v34 = vpop.permute.xlu0 %441 }
  0x93   : > { %v468_v55 = vmul.f32 %v461_v44, %v430_v33  ;;  %v469_v56 = vmul.f32 %v465_v45, %v430_v33  ;;  %v474_v36 = vmul.f32 %v461_v44, %v1510_v34  ;;  %v475_v39 = vmul.f32 %v465_v45, %v1510_v34 }
  0x97   : > { %v366_v40 = vpop.permute.xlu0 %365  ;;  %v381_v41 = vpop.permute.xlu1 %380 }
  0x98   : > { %v412_v47 = vmul.f32 %v1522_v42, %v366_v40  ;;  %v413_v48 = vmul.f32 %v1525_v43, %v366_v40  ;;  %v418_v7 = vmul.f32 %v1522_v42, %v381_v41  ;;  %v419_v9 = vmul.f32 %v1525_v43, %v381_v41 }
  0x9a   : > { %v478_v57 = vadd.f32 %v466_v50, %v412_v47  ;;  %v479_v58 = vadd.f32 %v467_v51, %v413_v48 }
  0x9b   : > { %v371_v46 = vpop.permute.xlu0 %370 }
  0x9c   : > { %v438_v49 = vpop.permute.xlu1 %437  ;;  %v414_v52 = vmul.f32 %v1522_v42, %v371_v46  ;;  %v415_v53 = vmul.f32 %v1525_v43, %v371_v46 }
  0x9d   : > { %v472_v5 = vmul.f32 %v461_v44, %v438_v49  ;;  %v473_v6 = vmul.f32 %v465_v45, %v438_v49 }
  0x9e   : > { %v480_v62 = vadd.f32 %v468_v55, %v414_v52  ;;  %v481_v63 = vadd.f32 %v469_v56, %v415_v53 }
  0x9f   : > { %v376_v54 = vpop.permute.xlu0 %375  ;;  %v484_v15 = vadd.f32 %v472_v5, %v418_v7  ;;  %v485_v18 = vadd.f32 %v473_v6, %v419_v9  ;;  %v554_v5 = vld [vmem:[%s1658_s4 + $0x20] sm:$0xff]  ;;  %v555_v6 = vld [vmem:[%s1658_s4 + $0x28] sm:$0xff] }
  0xa0   : > { %v416_v13 = vmul.f32 %v1522_v42, %v376_v54  ;;  %v417_v14 = vmul.f32 %v1525_v43, %v376_v54 }
  0xa1   : > { %v499_v59 = vpop.permute.xlu1 %498 }
  0xa2   : > { %v526_v60 = vadd.f32 %v499_v59, %v478_v57  ;;  %v527_v61 = vadd.f32 %v499_v59, %v479_v58  ;;  %v482_v27 = vadd.f32 %v470_v8, %v416_v13  ;;  %v483_v31 = vadd.f32 %v471_v12, %v417_v14 }
  0xa3   : > { %v504_v0 = vpop.permute.xlu0 %503 }
  0xa4   : > { %1195 = vtanh.f32 %v526_v60  ;;  %v528_v1 = vadd.f32 %v504_v0, %v480_v62  ;;  %v529_v2 = vadd.f32 %v504_v0, %v481_v63 }
  0xa5   : > { %1197 = vtanh.f32 %v527_v61  ;;  %v386_v3 = vpop.permute.xlu1 %385 }
  0xa6   : > { %1199 = vtanh.f32 %v528_v1  ;;  %v420_v25 = vmul.f32 %v1522_v42, %v386_v3  ;;  %v421_v28 = vmul.f32 %v1525_v43, %v386_v3  ;;  %v550_v1 = vld [vmem:[%s1658_s4] sm:$0xff]  ;;  %v552_v3 = vld [vmem:[%s1658_s4 + $0x10] sm:$0xff] }
  0xa7   : > { %1201 = vtanh.f32 %v529_v2  ;;  %v514_v10 = vpop.permute.xlu0 %513  ;;  %v551_v2 = vld [vmem:[%s1658_s4 + $0x8] sm:$0xff] }
  0xa8   : > { %v532_v20 = vadd.f32 %v514_v10, %v484_v15  ;;  %v533_v22 = vadd.f32 %v514_v10, %v485_v18  ;;  %v486_v46 = vadd.f32 %v474_v36, %v420_v25  ;;  %v487_v48 = vadd.f32 %v475_v39, %v421_v28 }
  0xa9   : > { %v391_v4 = vpop.permute.xlu1 %390 }
  0xaa   : > { %1203 = vtanh.f32 %v532_v20  ;;  %v422_v49 = vmul.f32 %v1522_v42, %v391_v4  ;;  %v423_v50 = vmul.f32 %v1525_v43, %v391_v4  ;;  %v553_v4 = vld [vmem:[%s1658_s4 + $0x18] sm:$0xff] }
  0xab   : > { %1205 = vtanh.f32 %v533_v22  ;;  %v565_v7 = vpop.permute.xlu0 %564 }
  0xae   : > { %v1196_v11 = vpop.eup %1195  ;;  %v446_v16 = vpop.permute.xlu1 %445 }
  0xaf   : > { %v1198_v17 = vpop.eup %1197  ;;  %v476_v40 = vmul.f32 %v461_v44, %v446_v16  ;;  %v477_v41 = vmul.f32 %v465_v45, %v446_v16 }
  0xb0   : > { %v1200_v19 = vpop.eup %1199 }
  0xb1   : > { %v1202_v21 = vpop.eup %1201  ;;  %v1115_v23 = vpack.c.bf16 %v1200_v19, %v1196_v11  ;;  %v488_v53 = vadd.f32 %v476_v40, %v422_v49  ;;  %v489_v54 = vadd.f32 %v477_v41, %v423_v50 }
  0xb2   : > { %v1113_v32 = vpack.c.bf16 %v1202_v21, %v1198_v17  ;;  %v575_v17 = vpop.permute.xlu0 %574 }
  0xb3   : > { %v509_v33 = vpop.permute.xlu1 %508 }
  0xb4   : > { %v530_v37 = vadd.f32 %v509_v33, %v482_v27  ;;  %v531_v38 = vadd.f32 %v509_v33, %v483_v31  ;;  %1114 = vmatprep.subr.bf16.mxu0 %v1113_v32  ;;  %v1204_v44 = vpop.eup %1203 }
  0xb5   : > { %1116 = vmatpush1.bf16.msra.mxu0 %v1115_v23  ;;  %v1206_v45 = vpop.eup %1205 }
  0xb6   : > { %1207 = vtanh.f32 %v530_v37  ;;  %v585_v33 = vpop.permute.xlu0 %584 }
  0xb7   : > { %1209 = vtanh.f32 %v531_v38  ;;  %v519_v47 = vpop.permute.xlu1 %518 }
  0xb8   : > { %v534_v51 = vadd.f32 %v519_v47, %v486_v46  ;;  %v535_v52 = vadd.f32 %v519_v47, %v487_v48 }
  0xba   : > { %1211 = vtanh.f32 %v534_v51 }
  0xbb   : > { %v524_v55 = vpop.permute.xlu1 %523  ;;  %1213 = vtanh.f32 %v535_v52 }
  0xbc   : > { %v536_v34 = vadd.f32 %v524_v55, %v488_v53  ;;  %v537_v56 = vadd.f32 %v524_v55, %v489_v54 }
  0xbe   : > { %1215 = vtanh.f32 %v536_v34 }
  0xbf   : > { %1217 = vtanh.f32 %v537_v56  ;;  %v570_v12 = vpop.permute.xlu1 %569 }
  0xc0   : > { %v1208_v57 = vpop.eup %1207 }
  0xc1   : > { %v1210_v58 = vpop.eup %1209  ;;  %v1119_v59 = vpack.c.bf16 %v1204_v44, %v1208_v57 }
  0xc2   : > { %v1117_v60 = vpack.c.bf16 %v1206_v45, %v1210_v58 }
  0xc3   : > { %v580_v22 = vpop.permute.xlu1 %579 }
  0xc4   : > { %1118 = vmatprep.subr.bf16.mxu0 %v1117_v60  ;;  %v1212_v42 = vpop.eup %1211 }
  0xc5   : > { %1120 = vmatpush1.bf16.msra.mxu0 %v1119_v59  ;;  %v1214_v43 = vpop.eup %1213 }
  0xc7   : > { %v590_v48 = vpop.permute.xlu1 %589 }
  0xc8   : > { %v1216_v61 = vpop.eup %1215 }
  0xc9   : > { %v1218_v62 = vpop.eup %1217  ;;  %v1123_v63 = vpack.c.bf16 %v1216_v61, %v1212_v42  ;;  %v725_v61 = vld [vmem:[%s1660_s6 + $0x8] sm:$0xff] }
  0xca   : > { %v1121_v0 = vpack.c.bf16 %v1218_v62, %v1214_v43  ;;  %v724_v43 = vld [vmem:[%s1660_s6] sm:$0xff]  ;;  %v726_v62 = vld [vmem:[%s1660_s6 + $0x10] sm:$0xff] }
  0xcc   : > { %1122 = vmatprep.subr.bf16.mxu0 %v1121_v0  ;;  %v735_v0 = vpop.permute.xlu0 %734 }
  0xcd   : > { %1124 = vmatpush1.bf16.msra.mxu0 %v1123_v63  ;;  %v727_v63 = vld [vmem:[%s1660_s6 + $0x18] sm:$0xff] }
  0xd0   : > { %1091 = vmatmul.mubr.msk.f32.vlgmr.msra.gmra.mrb[0].mxu0 %vm592_vm0, %v550_v1 }
  0xd1   : > { %681 = vmatprep.mubr.f32.mxu0 %v1325_v24 }
  0xd4   : > { %1092 = vmatmul.mubr.msk.f32.gmra.mrb[2].mxu0 %vm592_vm0, %v551_v2 }
  0xd5   : > { %687 = vmatprep.mubr.f32.mxu0 %v1325_v24 }
  0xd8   : > { %1093 = vmatmul.mubr.msk.f32.gmra.mrb[4].mxu0 %vm592_vm0, %v552_v3 }
  0xd9   : > { %693 = vmatprep.mubr.f32.mxu0 %v1325_v24 }
  0xdc   : > { %1094 = vmatmul.mubr.msk.f32.gmra.mrb[6].mxu0 %vm592_vm0, %v553_v4 }
  0xdd   : > { %699 = vmatprep.mubr.f32.mxu0 %v1325_v24 }
  0xe0   : > { %1095 = vmatmul.mubr.msk.f32.gmra.mrb[8].mxu0 %vm592_vm0, %v554_v5  ;;  %v740_v5 = vpop.permute.xlu1 %739 }
  0xe1   : > { %705 = vmatprep.mubr.f32.mxu0 %v1325_v24 }
  0xe4   : > { %1096 = vmatmul.mubr.msk.f32.gmra.mrb[10].mxu0 %vm592_vm0, %v555_v6 }
 0x1a3   : > { %v677_v8 = vpop.f32.mrb[0].mxu0 }
 0x1a4   : > { %v678_v9 = vadd.f32 %v677_v8, %v565_v7  ;;  %v679_v10 = vpop.f32.mrb[1].mxu0 }
 0x1a5   : > { %v680_v11 = vadd.f32 %v679_v10, %v565_v7  ;;  %v745_v10 = vpop.permute.xlu0 %744 }
 0x1a6   : > { %1219 = vtanh.f32 %v678_v9 }
 0x1a7   : > { %v683_v13 = vpop.f32.mrb[2].mxu0  ;;  %1221 = vtanh.f32 %v680_v11 }
 0x1a8   : > { %v684_v14 = vadd.f32 %v683_v13, %v570_v12  ;;  %v685_v15 = vpop.f32.mrb[3].mxu0 }
 0x1a9   : > { %v686_v16 = vadd.f32 %v685_v15, %v570_v12 }
 0x1aa   : > { %1223 = vtanh.f32 %v684_v14 }
 0x1ab   : > { %1225 = vtanh.f32 %v686_v16  ;;  %v689_v18 = vpop.f32.mrb[4].mxu0 }
 0x1ac   : > { %v690_v19 = vadd.f32 %v689_v18, %v575_v17  ;;  %v691_v20 = vpop.f32.mrb[5].mxu0 }
 0x1ad   : > { %v692_v21 = vadd.f32 %v691_v20, %v575_v17 }
 0x1ae   : > { %1227 = vtanh.f32 %v690_v19 }
 0x1af   : > { %v695_v23 = vpop.f32.mrb[6].mxu0  ;;  %1229 = vtanh.f32 %v692_v21 }
 0x1b0   : > { %v696_v25 = vadd.f32 %v695_v23, %v580_v22  ;;  %v697_v27 = vpop.f32.mrb[7].mxu0  ;;  %v1220_v32 = vpop.eup %1219 }
 0x1b1   : > { %v698_v31 = vadd.f32 %v697_v27, %v580_v22  ;;  %v1222_v28 = vpop.eup %1221 }
 0x1b2   : > { %1231 = vtanh.f32 %v696_v25 }
 0x1b3   : > { %1233 = vtanh.f32 %v698_v31  ;;  %v701_v36 = vpop.f32.mrb[8].mxu0 }
 0x1b4   : > { %v1224_v37 = vpop.eup %1223  ;;  %v702_v38 = vadd.f32 %v701_v36, %v585_v33  ;;  %v703_v39 = vpop.f32.mrb[9].mxu0 }
 0x1b5   : > { %v1226_v40 = vpop.eup %1225  ;;  %v704_v41 = vadd.f32 %v703_v39, %v585_v33  ;;  %v1127_v46 = vpack.c.bf16 %v1224_v37, %v1220_v32  ;;  %v861_v37 = vld [vmem:[%s1662_s8] sm:$0x3]  ;;  %v939_v39 = vadd.f32 1.0, %v1512_v35 }
 0x1b6   : > { %v1125_v47 = vpack.c.bf16 %v1226_v40, %v1222_v28  ;;  %1235 = vtanh.f32 %v702_v38  ;;  %v1102_v38 = vadd.f32 -1.0, %v1512_v35 }
 0x1b7   : > { %v707_v49 = vpop.f32.mrb[10].mxu0  ;;  %1237 = vtanh.f32 %v704_v41  ;;  %v1103_v41 = vrot.slane %v939_v39, 9 }
 0x1b8   : > { %v708_v50 = vadd.f32 %v707_v49, %v590_v48  ;;  %v709_v51 = vpop.f32.mrb[11].mxu0  ;;  %1126 = vmatprep.subr.bf16.mxu1 %v1125_v47  ;;  %v1228_v53 = vpop.eup %1227  ;;  %v938_v40 = vmul.f32 %v1102_v38, %v1512_v35  ;;  %v1104_v47 = vrot.slane %v1512_v35, 9 }
 0x1b9   : > { %v710_v52 = vadd.f32 %v709_v51, %v590_v48  ;;  %1128 = vmatpush1.bf16.msra.mxu1 %v1127_v46  ;;  %v1230_v54 = vpop.eup %1229 }
 0x1ba   : > { %1239 = vtanh.f32 %v708_v50  ;;  %v944_v46 = vmul.f32 %v1103_v41, %v938_v40 }
 0x1bb   : > { %1241 = vtanh.f32 %v710_v52  ;;  %v1105_v52 = vld.sshfl [vmem:[%s353_s26] sm:$0x33 pattern:$0x76325410]  ;;  %s1265_s26 = scalar_lea.vmem %s1264_s25, 128 }
 0x1bc   : > { %v1232_v55 = vpop.eup %1231  ;;  %v948_v48 = vmul.f32 %v1104_v47, %v944_v46  ;;  %p1267_p1 = scmp.lt.s32.totalorder %s1265_s26, %s1259_s24 }
 0x1bd   : > { %v1234_v34 = vpop.eup %1233  ;;  %v1131_v56 = vpack.c.bf16 %v1232_v55, %v1228_v53 }
 0x1be   : > { %v1129_v44 = vpack.c.bf16 %v1234_v34, %v1230_v54  ;;  %v953_v49 = vrot.slane %v948_v48, %v1505_v29  ;;  %v957_v50 = vrot.slane %v948_v48, %v400_v30  ;;  %v979_v54 = vcombine.high %v1105_v52, %v1105_v52  ;;  %p1268_p2 = por %p1267_p1, %p1266_p0 }
 0x1c0   : > { %1130 = vmatprep.subr.bf16.mxu1 %v1129_v44  ;;  %v1236_v45 = vpop.eup %1235  ;;  %v963_v51 = vrot.slane %v953_v49, %v1505_v29  ;;  %v967_v53 = vrot.slane %v957_v50, %v1505_v29  ;;  %p1269_p3 = pnand %p1268_p2, %p1262_p13 }
 0x1c1   : > { %1132 = vmatpush1.bf16.msra.mxu1 %v1131_v56  ;;  %v1238_v57 = vpop.eup %1237 }
 0x1c4   : > { %v1240_v58 = vpop.eup %1239 }
 0x1c5   : > { %v1242_v59 = vpop.eup %1241  ;;  %v1135_v60 = vpack.c.bf16 %v1240_v58, %v1236_v45 }
 0x1c6   : > { %v1133_v42 = vpack.c.bf16 %v1242_v59, %v1238_v57 }
 0x1c8   : > { %1134 = vmatprep.subr.bf16.mxu1 %v1133_v42 }
 0x1c9   : > { %1136 = vmatpush1.bf16.msra.mxu1 %v1135_v60 }
 0x1cc   : > { %1097 = vmatmul.mubr.msk.f32.vlgmr.msra.gmra.mrb[0].mxu1 %vm592_vm0, %v724_v43 }
 0x1cd   : > { %834 = vmatprep.mubr.f32.mxu1 %v1325_v24 }
 0x1d0   : > { %1098 = vmatmul.mubr.msk.f32.gmra.mrb[2].mxu1 %vm592_vm0, %v725_v61 }
 0x1d1   : > { %840 = vmatprep.mubr.f32.mxu1 %v1325_v24 }
 0x1d4   : > { %1099 = vmatmul.mubr.msk.f32.gmra.mrb[4].mxu1 %vm592_vm0, %v726_v62 }
 0x1d5   : > { %846 = vmatprep.mubr.f32.mxu1 %v1325_v24 }
 0x1d8   : > { %1100 = vmatmul.mubr.msk.f32.gmra.mrb[6].mxu1 %vm592_vm0, %v727_v63 }
 0x1d9   : > { %930 = vmatprep.mubr.f32.mxu1 %v1325_v24  ;;  %v750_v24 = vpop.permute.xlu1 %749 }
 0x29f   : > { %v830_v1 = vpop.f32.mrb[0].mxu1 }
 0x2a0   : > { %v831_v2 = vadd.f32 %v830_v1, %v735_v0  ;;  %v832_v3 = vpop.f32.mrb[1].mxu1 }
 0x2a1   : > { %v833_v4 = vadd.f32 %v832_v3, %v735_v0 }
 0x2a2   : > { %1243 = vtanh.f32 %v831_v2 }
 0x2a3   : > { %v836_v6 = vpop.f32.mrb[2].mxu1  ;;  %1245 = vtanh.f32 %v833_v4 }
 0x2a4   : > { %v837_v7 = vadd.f32 %v836_v6, %v740_v5  ;;  %v838_v8 = vpop.f32.mrb[3].mxu1 }
 0x2a5   : > { %v839_v9 = vadd.f32 %v838_v8, %v740_v5 }
 0x2a6   : > { %1247 = vtanh.f32 %v837_v7 }
 0x2a7   : > { %1249 = vtanh.f32 %v839_v9  ;;  %v842_v11 = vpop.f32.mrb[4].mxu1 }
 0x2a8   : > { %v843_v12 = vadd.f32 %v842_v11, %v745_v10  ;;  %v844_v13 = vpop.f32.mrb[5].mxu1 }
 0x2a9   : > { %v845_v14 = vadd.f32 %v844_v13, %v745_v10 }
 0x2aa   : > { %1251 = vtanh.f32 %v843_v12 }
 0x2ab   : > { %v848_v15 = vpop.f32.mrb[6].mxu1  ;;  %1253 = vtanh.f32 %v845_v14 }
 0x2ac   : > { %v849_v16 = vadd.f32 %v848_v15, %v750_v24  ;;  %v850_v17 = vpop.f32.mrb[7].mxu1  ;;  %v1244_v19 = vpop.eup %1243 }
 0x2ad   : > { %v851_v18 = vadd.f32 %v850_v17, %v750_v24  ;;  %v1246_v20 = vpop.eup %1245 }
 0x2ae   : > { %1255 = vtanh.f32 %v849_v16 }
 0x2af   : > { %1257 = vtanh.f32 %v851_v18 }
 0x2b0   : > { %v1248_v21 = vpop.eup %1247 }
 0x2b1   : > { %v1250_v22 = vpop.eup %1249  ;;  %v1139_v23 = vpack.c.bf16 %v1248_v21, %v1244_v19 }
 0x2b2   : > { %v1137_v25 = vpack.c.bf16 %v1250_v22, %v1246_v20 }
 0x2b4   : > { %1138 = vmatprep.subr.bf16.mxu1 %v1137_v25  ;;  %v1252_v27 = vpop.eup %1251 }
 0x2b5   : > { %1140 = vmatpush1.bf16.msra.mxu1 %v1139_v23  ;;  %v1254_v31 = vpop.eup %1253 }
 0x2b8   : > { %v1256_v32 = vpop.eup %1255 }
 0x2b9   : > { %v1258_v28 = vpop.eup %1257  ;;  %v1143_v33 = vpack.c.bf16 %v1256_v32, %v1252_v27 }
 0x2ba   : > { %v1141_v36 = vpack.c.bf16 %v1258_v28, %v1254_v31 }
 0x2bc   : > { %1142 = vmatprep.subr.bf16.mxu1 %v1141_v36 }
 0x2bd   : > { %1144 = vmatpush1.bf16.msra.mxu1 %v1143_v33 }
 0x2c0   : > { %1101 = vmatmul.mubr.msk.f32.vlgmr.msra.gmra.mrb[8].mxu1 %vm862_vm1, %v861_v37 }
 0x393   : > { %v932_v35 = vpop.f32.mrb[8].mxu1 }
 0x394   : > { %v968_v55 = vmul.f32 %v963_v51, %v932_v35  ;;  %v934_v34 = vpop.f32.mrb[9].mxu1 }
 0x395   : > { %v969_v56 = vmul.f32 %v967_v53, %v934_v34 }
 0x396   : > { %v982_v44 = vadd.f32 %v1105_v52, %v968_v55 }
 0x397   : > { %v983_v45 = vadd.f32 %v979_v54, %v969_v56 }
 0x399   : > { %v986_v26 = vcombine.low %v982_v44, %v983_v45 }
 0x39b   : > { %1106 = vst.sshfl [vmem:[%s342_s16] sm:$0x33 pattern:$0x76325410] %v986_v26 }
 0x39c   : > { %1272 = shalt.err (!%p1269_p3)
}
 0x39d   : > { %s1273_s27 = scalar_lea.hbm %s1612_s22, 64  ;;  %s1277_s16 = scalar_lea.hbm %s1663_s9, 128 }
 0x39e   : > { %p1274_p4 = scmp.ne.s32.totalorder %s1612_s22, %s1273_s27  ;;  %p1278_p9 = scmp.lt.u32.totalorder %s1612_s22, %s1663_s9 }
 0x39f   : > { %p1279_p10 = scmp.lt.u32.totalorder %s1277_s16, %s1273_s27  ;;  %p1281_p12 = scmp.lt.u32.totalorder %s1273_s27, %s1612_s22 }
 0x3a0   : > { %p1275_p7 = pnand %p1274_p4, %p1415_p5 }
 0x3a1   : > { %p1280_p11 = por %p1279_p10, %p1278_p9 }
 0x3a2   : > { %p1276_p8 = pneg %p1275_p7 }
 0x3a3   : > { %p1282_p13 = por %p1281_p12, %p1280_p11 }
 0x3a5   : > { %p1283_p0 = pnand %p1282_p13, %p1276_p8 }
 0x3a7   : > { %1286 = shalt.err (!%p1283_p0)
}
 0x3a8   : > { %1145 = dma.vmem_to_hbm [thread:$0]  (%p1415_p5), %s1614_s14, 64, %s1612_s22, %s997_s23  }
 0x3a9 PF: > { %p1151_p1 = scmp.ge.s32.totalorder %s1321_s12, 2  ;;  %s1023_s24 = sand.u32 1, %s1309_s30  }
 0x3aa   : > { %s1024_s13 = scalar_lea.sflag [#allocation3], %s1023_s24 }
 0x3ab   : > { %p1148_p2 = pnand %p1151_p1, %p1419_p6 }
 0x3ad   : > { %1304 = dma.done.wait (!%p1148_p2), %s1024_s13, 64  }
 0x3ae   : > { %1306 = vsyncadd (!%p1148_p2), %s1024_s13, 4294967232  ;;  %p19_p3 = scmp.ge.s32.totalorder %s1402_s15, 4   ;;  %s1666_s30 = smov %s1313_s10 }
 0x3af   : > { %s1667_s10 = smov %s1317_s11  ;;  %s1668_s11 = smov %s1413_s18 }
 0x3b0   : > { %s1669_s12 = smov %s1402_s15  ;;  %21 = sbr.rel (!%p19_p3) target bundleno = 3 (0x3), region = 94 }
 0x3b7   :  { %1029 = vsyncpa [#allocation3], 1 }
 0x3b8   :  { %1031 = vsyncpa [#allocation3 + $0x1], 1 }

</bundles_post_ra>
